<compile_context>
chip_gen: v5e
topology: v5e:2x2
jax: 0.10.0
libtpu: 0.0.40
codegen_flags: <defaults>
</compile_context>

<pallas_src>
import functools

import jax
import jax.numpy as jnp
from jax.experimental import pallas as pl
from jax.experimental.pallas import tpu as pltpu


LN_EPS = 1e-5  # nn.LayerNorm default


def _round_up(a: int, b: int) -> int:
    return ((a + b - 1) // b) * b


def _choose_row_tile(M: int, tm_max: int) -> int:
    """Row tile: multiple of 16 (bf16 sublane packing), >= 2 grid steps when M
    is large enough, and an even grid (v7x megacore balance) when > 1 step."""
    if M <= 32:
        return M  # single step; block rows == full array dim (no padding rules hit)
    tm_eff = min(tm_max, _round_up(pl.cdiv(M, 2), 16))
    grid_m = pl.cdiv(M, tm_eff)
    if grid_m > 1 and grid_m % 2 == 1:
        grid_m += 1
        tm_eff = _round_up(pl.cdiv(M, grid_m), 16)
    return tm_eff


def _proj_head_kernel(x_ref, w1_ref, w2_ref, vec_ref, o_ref):
    # x_ref: (tm, E) native dtype, w1_ref: (E, P) bf16, w2_ref: (P, P) bf16
    # vec_ref: (4, P) f32 rows = [b1, b2, gamma, beta], o_ref: (tm, P) f32
    x = x_ref[...].astype(jnp.bfloat16)  # in-register cast; no wrapper HBM pass
    vec = vec_ref[...]
    b1 = vec[0:1, :]
    b2 = vec[1:2, :]
    gamma = vec[2:3, :]
    beta = vec[3:4, :]

    # projection = Linear(E -> P): bf16 operands, f32 accumulation on the MXU.
    projected = jnp.dot(x, w1_ref[...],
                        preferred_element_type=jnp.float32) + b1

    # ReLU, then back to bf16 for the second MXU pass.
    h = jnp.maximum(projected, 0.0).astype(jnp.bfloat16)

    # fc = Linear(P -> P)
    y = jnp.dot(h, w2_ref[...],
                preferred_element_type=jnp.float32) + b2

    # dropout: identity at inference time
    # TODO(synk): training-mode dropout (p=0.1) not applied (eval semantics).

    # residual (adds pre-ReLU projection, matching the PyTorch module)
    y = y + projected

    # LayerNorm over last dim (f32)
    mean = jnp.mean(y, axis=-1, keepdims=True)
    centered = y - mean
    var = jnp.mean(centered * centered, axis=-1, keepdims=True)
    normed = centered * jax.lax.rsqrt(var + LN_EPS)
    o_ref[...] = (normed * gamma + beta).astype(o_ref.dtype)


@functools.partial(jax.jit, static_argnames=("tm",))
def projection_head_forward(x, w1, b1, w2, b2, gamma, beta, *, tm=1024):
    """x: (..., E). Returns (M, P) with M = prod(leading dims), f32."""
    E = x.shape[-1]
    x2d = x.reshape(-1, E)  # keep native dtype; cast to bf16 inside the kernel
    M = x2d.shape[0]
    P = w1.shape[1]

    tm_eff = _choose_row_tile(M, tm)
    grid_m = pl.cdiv(M, tm_eff)

    # bf16 matmul weights (f32 accumulation inside the kernel).
    w1_bf = w1.astype(jnp.bfloat16)
    w2_bf = w2.astype(jnp.bfloat16)
    # Pack the four per-feature vectors into one (4, P) f32 block.
    vec = jnp.stack([b1, b2, gamma, beta], axis=0).astype(jnp.float32)

    const = pl.Buffered(1)  # single-buffer grid-invariant operands

    # VMEM budget: double-buffered x/out, single-buffered constants, headroom
    # for compute temporaries. Cap below v7x's 64 MiB physical VMEM.
    in_bytes = jnp.dtype(x2d.dtype).itemsize
    vmem_budget = (2 * tm_eff * E * in_bytes          # x (double-buffered)
                   + E * P * 2 + P * P * 2 + 4 * P * 4  # constants (single)
                   + 2 * tm_eff * P * 4                 # out (double-buffered)
                   + 4 * tm_eff * P * 4)                # temporaries headroom
    vmem_limit = min(max((vmem_budget * 3) // 2, 32 << 20), 56 << 20)

    out = pl.pallas_call(
        _proj_head_kernel,
        out_shape=jax.ShapeDtypeStruct((M, P), jnp.float32),
        grid_spec=pltpu.PrefetchScalarGridSpec(
            num_scalar_prefetch=0,
            grid=(grid_m,),
            in_specs=[
                pl.BlockSpec((tm_eff, E), lambda i: (i, 0)),   # x tile (streamed)
                pl.BlockSpec((E, P), lambda i: (0, 0),
                             pipeline_mode=const),             # W1 (constant)
                pl.BlockSpec((P, P), lambda i: (0, 0),
                             pipeline_mode=const),             # W2 (constant)
                pl.BlockSpec((4, P), lambda i: (0, 0),
                             pipeline_mode=const),             # b1/b2/gamma/beta
            ],
            out_specs=pl.BlockSpec((tm_eff, P), lambda i: (i, 0)),
        ),
        compiler_params=pltpu.CompilerParams(
            dimension_semantics=("parallel",),
            vmem_limit_bytes=int(vmem_limit),
        ),
    )(x2d, w1_bf, w2_bf, vec)

    return out


def init_params(key, embedding_dim, projection_dim=128):
    """Deterministic init mirroring nn.Linear default (uniform +-1/sqrt(fan_in))."""
    k1, k2, k3, k4 = jax.random.split(key, 4)
    lim1 = 1.0 / (embedding_dim ** 0.5)
    lim2 = 1.0 / (projection_dim ** 0.5)
    # Stored as (in, out) so the kernel does x @ W (== PyTorch x @ W.T with W (out, in)).
    w1 = jax.random.uniform(k1, (embedding_dim, projection_dim),
                            jnp.float32, -lim1, lim1)
    b1 = jax.random.uniform(k2, (projection_dim,), jnp.float32, -lim1, lim1)
    w2 = jax.random.uniform(k3, (projection_dim, projection_dim),
                            jnp.float32, -lim2, lim2)
    b2 = jax.random.uniform(k4, (projection_dim,), jnp.float32, -lim2, lim2)
    gamma = jnp.ones((projection_dim,), jnp.float32)
    beta = jnp.zeros((projection_dim,), jnp.float32)
    return w1, b1, w2, b2, gamma, beta


def _reference(x, w1, b1, w2, b2, gamma, beta):
    """Pure-JAX reference with the same numerics (bf16 matmul in, f32 acc)."""
    x2d = x.reshape(-1, x.shape[-1])
    xb = x2d.astype(jnp.bfloat16)
    w1b = w1.astype(jnp.bfloat16)
    w2b = w2.astype(jnp.bfloat16)
    projected = jnp.dot(xb, w1b, preferred_element_type=jnp.float32) + b1
    h = jnp.maximum(projected, 0.0).astype(jnp.bfloat16)
    y = jnp.dot(h, w2b, preferred_element_type=jnp.float32) + b2
    y = y + projected
    mean = jnp.mean(y, axis=-1, keepdims=True)
    centered = y - mean
    var = jnp.mean(centered * centered, axis=-1, keepdims=True)
    return centered * jax.lax.rsqrt(var + LN_EPS) * gamma + beta


if __name__ == "__main__":
    key = jax.random.PRNGKey(0)
    k_x, k_x2, k_p = jax.random.split(key, 3)

    batch, seq, embedding_dim, projection_dim = 2, 8, 32, 128
    params = init_params(k_p, embedding_dim, projection_dim)

    # Case 1: M = 16 (single grid step, block rows == full array dim).
    x = jax.random.normal(k_x, (batch, seq, embedding_dim), jnp.float32)
    out = jax.block_until_ready(projection_head_forward(x, *params))
    ref = _reference(x, *params)
    assert out.shape == (batch * seq, projection_dim)
    assert jnp.allclose(out, ref, atol=2e-4, rtol=2e-4), "mismatch vs reference (case 1)"

    # Case 2: M = 45 — multi-step grid with a ragged (masked) last row-block.
    x2 = jax.random.normal(k_x2, (5, 9, embedding_dim), jnp.float32)
    out2 = jax.block_until_ready(projection_head_forward(x2, *params))
    ref2 = _reference(x2, *params)
    assert out2.shape == (45, projection_dim)
    assert jnp.allclose(out2, ref2, atol=2e-4, rtol=2e-4), "mismatch vs reference (case 2)"

    print("KERNEL_OK")
</pallas_src>

<mosaic_0001>
module attributes {stable_mosaic.version = 11 : i64} {
  func.func @_proj_head_kernel(%arg0: i32, %arg1: memref<16x32xf32, #tpu.memory_space<vmem>>, %arg2: memref<32x128xbf16, #tpu.memory_space<vmem>>, %arg3: memref<128x128xbf16, #tpu.memory_space<vmem>>, %arg4: memref<4x128xf32, #tpu.memory_space<vmem>>, %arg5: memref<16x128xf32, #tpu.memory_space<vmem>>) attributes {dimension_semantics = [#tpu.dimension_semantics<parallel>], iteration_bounds = array<i64: 1>, scalar_prefetch = 0 : i64, scratch_operands = 0 : i64, tpu.core_type = #tpu.core_type<tc>, window_params = [{transform_indices = @transform_0, window_bounds = array<i64: 16, 32>}, {pipeline_mode = #tpu.pipeline_mode<synchronous>, transform_indices = @transform_1, window_bounds = array<i64: 32, 128>}, {pipeline_mode = #tpu.pipeline_mode<synchronous>, transform_indices = @transform_2, window_bounds = array<i64: 128, 128>}, {pipeline_mode = #tpu.pipeline_mode<synchronous>, transform_indices = @transform_3, window_bounds = array<i64: 4, 128>}, {transform_indices = @transform_4, window_bounds = array<i64: 16, 128>}]} {
    %c0 = arith.constant 0 : index
    %c0_0 = arith.constant 0 : index
    %0 = vector.load %arg1[%c0, %c0_0] : memref<16x32xf32, #tpu.memory_space<vmem>>, vector<16x32xf32>
    %1 = arith.truncf %0 : vector<16x32xf32> to vector<16x32xbf16>
    %c0_1 = arith.constant 0 : index
    %c0_2 = arith.constant 0 : index
    %2 = vector.load %arg4[%c0_1, %c0_2] : memref<4x128xf32, #tpu.memory_space<vmem>>, vector<4x128xf32>
    %3 = vector.extract_strided_slice %2 {offsets = [0, 0], sizes = [1, 128], strides = [1, 1]} : vector<4x128xf32> to vector<1x128xf32>
    %4 = vector.extract_strided_slice %2 {offsets = [1, 0], sizes = [1, 128], strides = [1, 1]} : vector<4x128xf32> to vector<1x128xf32>
    %5 = vector.extract_strided_slice %2 {offsets = [2, 0], sizes = [1, 128], strides = [1, 1]} : vector<4x128xf32> to vector<1x128xf32>
    %6 = vector.extract_strided_slice %2 {offsets = [3, 0], sizes = [1, 128], strides = [1, 1]} : vector<4x128xf32> to vector<1x128xf32>
    %c0_3 = arith.constant 0 : index
    %c0_4 = arith.constant 0 : index
    %7 = vector.load %arg2[%c0_3, %c0_4] : memref<32x128xbf16, #tpu.memory_space<vmem>>, vector<32x128xbf16>
    %cst = arith.constant dense<0.000000e+00> : vector<16x128xf32>
    %8 = tpu.matmul %1, %7, %cst {dimension_numbers = #tpu.dot_dimension_numbers<[1], [0], [0], [1], [0, 0, 1, 1], [], []>} : vector<16x32xbf16>, vector<32x128xbf16>, vector<16x128xf32> -> vector<16x128xf32>
    %9 = vector.broadcast %3 : vector<1x128xf32> to vector<16x128xf32>
    %10 = arith.addf %8, %9 : vector<16x128xf32>
    %cst_5 = arith.constant 0.000000e+00 : f32
    %11 = vector.broadcast %cst_5 : f32 to vector<16x128xf32>
    %12 = arith.maximumf %10, %11 : vector<16x128xf32>
    %13 = arith.truncf %12 : vector<16x128xf32> to vector<16x128xbf16>
    %c0_6 = arith.constant 0 : index
    %c0_7 = arith.constant 0 : index
    %14 = vector.load %arg3[%c0_6, %c0_7] : memref<128x128xbf16, #tpu.memory_space<vmem>>, vector<128x128xbf16>
    %cst_8 = arith.constant dense<0.000000e+00> : vector<16x128xf32>
    %15 = tpu.matmul %13, %14, %cst_8 {dimension_numbers = #tpu.dot_dimension_numbers<[1], [0], [0], [1], [0, 0, 1, 1], [], []>} : vector<16x128xbf16>, vector<128x128xbf16>, vector<16x128xf32> -> vector<16x128xf32>
    %16 = vector.broadcast %4 : vector<1x128xf32> to vector<16x128xf32>
    %17 = arith.addf %15, %16 : vector<16x128xf32>
    %18 = arith.addf %17, %10 : vector<16x128xf32>
    %cst_9 = arith.constant dense<0.000000e+00> : vector<16xf32>
    %19 = vector.multi_reduction <add>, %18, %cst_9 [1] : vector<16x128xf32> to vector<16xf32>
    %20 = vector.shape_cast %19 : vector<16xf32> to vector<16x1xf32>
    %cst_10 = arith.constant 1.280000e+02 : f32
    %21 = vector.broadcast %cst_10 : f32 to vector<16x1xf32>
    %22 = arith.divf %20, %21 : vector<16x1xf32>
    %23 = vector.broadcast %22 : vector<16x1xf32> to vector<16x128xf32>
    %24 = arith.subf %18, %23 : vector<16x128xf32>
    %25 = arith.mulf %24, %24 : vector<16x128xf32>
    %cst_11 = arith.constant dense<0.000000e+00> : vector<16xf32>
    %26 = vector.multi_reduction <add>, %25, %cst_11 [1] : vector<16x128xf32> to vector<16xf32>
    %27 = vector.shape_cast %26 : vector<16xf32> to vector<16x1xf32>
    %cst_12 = arith.constant 1.280000e+02 : f32
    %28 = vector.broadcast %cst_12 : f32 to vector<16x1xf32>
    %29 = arith.divf %27, %28 : vector<16x1xf32>
    %cst_13 = arith.constant 9.99999974E-6 : f32
    %30 = vector.broadcast %cst_13 : f32 to vector<16x1xf32>
    %31 = arith.addf %29, %30 : vector<16x1xf32>
    %32 = math.rsqrt %31 : vector<16x1xf32>
    %33 = vector.broadcast %32 : vector<16x1xf32> to vector<16x128xf32>
    %34 = arith.mulf %24, %33 : vector<16x128xf32>
    %35 = vector.broadcast %5 : vector<1x128xf32> to vector<16x128xf32>
    %36 = arith.mulf %34, %35 : vector<16x128xf32>
    %37 = vector.broadcast %6 : vector<1x128xf32> to vector<16x128xf32>
    %38 = arith.addf %36, %37 : vector<16x128xf32>
    %c0_14 = arith.constant 0 : index
    %c0_15 = arith.constant 0 : index
    %39 = vector.load %arg5[%c0_14, %c0_15] : memref<16x128xf32, #tpu.memory_space<vmem>>, vector<16x128xf32>
    tpu.vector_store %arg5[%c0_14, %c0_15], %38 {strides = array<i32>} : memref<16x128xf32, #tpu.memory_space<vmem>>, vector<16x128xf32>,
    return
  }
  func.func @transform_0(%arg0: i32) -> (i32, i32) {
    %c0_i32 = arith.constant 0 : i32
    %c0_i32_0 = arith.constant 0 : i32
    return %arg0, %c0_i32 : i32, i32
  }
  func.func @transform_1(%arg0: i32) -> (i32, i32) {
    %c0_i32 = arith.constant 0 : i32
    %c0_i32_0 = arith.constant 0 : i32
    %c0_i32_1 = arith.constant 0 : i32
    return %c0_i32, %c0_i32_0 : i32, i32
  }
  func.func @transform_2(%arg0: i32) -> (i32, i32) {
    %c0_i32 = arith.constant 0 : i32
    %c0_i32_0 = arith.constant 0 : i32
    %c0_i32_1 = arith.constant 0 : i32
    return %c0_i32, %c0_i32_0 : i32, i32
  }
  func.func @transform_3(%arg0: i32) -> (i32, i32) {
    %c0_i32 = arith.constant 0 : i32
    %c0_i32_0 = arith.constant 0 : i32
    %c0_i32_1 = arith.constant 0 : i32
    return %c0_i32, %c0_i32_0 : i32, i32
  }
  func.func @transform_4(%arg0: i32) -> (i32, i32) {
    %c0_i32 = arith.constant 0 : i32
    %c0_i32_0 = arith.constant 0 : i32
    return %arg0, %c0_i32 : i32, i32
  }
}

</mosaic_0001>

<bundles_post_ra>
// kernel: projection_head_forward.1
= control target key start
LH: loop header
LB: loop body
LE: loop exit
PB: predicated region body
PF: predicated region fallthrough
CT: control target
= control target key end

     0   :  { %s379_s0 = inlined_call_operand.vmem [shape: f32[16,32], index: 0, kind: input, shape index: {}]   ;;  %s380_s1 = inlined_call_operand.vmem [shape: bf16[32,128], index: 1, kind: input, shape index: {}]   ;;  %s381_s2 = inlined_call_operand.vmem [shape: bf16[128,128], index: 2, kind: input, shape index: {}]   ;;  %s382_s3 = inlined_call_operand.vmem [shape: f32[4,128], index: 3, kind: input, shape index: {}]   ;;  %s383_s4 = inlined_call_operand.hbm [shape: f32[16,128], index: 4, kind: output, shape index: {}]  }
   0x1   :  { %v257_v0 = vld [vmem:[%s380_s1 + $0x8] sm:$0xff]  ;;  %v265_v1 = vld [vmem:[%s381_s2 + $0x38] sm:$0xff]  ;;  %v256_v2 = vld [vmem:[%s380_s1] sm:$0xff] }
   0x2   :  { %50 = vmatpush.bf16.msra.mxu0 %v257_v0  ;;  %v19_v3 = vld [vmem:[%s379_s0] sm:$0xff]  ;;  %v20_v4 = vld [vmem:[%s379_s0 + $0x8] sm:$0xff]  ;;  %126 = vmatpush.bf16.msra.mxu1 %v265_v1  ;;  %v264_v5 = vld [vmem:[%s381_s2 + $0x30] sm:$0xff] }
   0x3   :  { %9 = vsyncpa [#allocation3], 0  ;;  %v21_v6 = vpack.c.bf16 %v20_v4, %v19_v3  ;;  %vm40_vm0 = vcmask 261120   ;;  %v263_v7 = vld [vmem:[%s381_s2 + $0x28] sm:$0xff]  ;;  %v262_v8 = vld [vmem:[%s381_s2 + $0x20] sm:$0xff]  ;;  %v302_v29 = vmov 128.0  }
   0x4   :  { %v261_v9 = vld [vmem:[%s381_s2 + $0x18] sm:$0xff]  ;;  %v260_v10 = vld [vmem:[%s381_s2 + $0x10] sm:$0xff]  ;;  %v259_v11 = vld [vmem:[%s381_s2 + $0x8] sm:$0xff]  ;;  %270 = vrcp.f32 %v302_v29  ;;  %s203_s15 = sshll.u32 %s383_s4, 4  ;;  %s304_s16 = smov 128   ;;  %s204_s15 = int_to_ptr.hbm [resolvable:$true] %s203_s15 }
   0x5   :  { %v258_v12 = vld [vmem:[%s381_s2] sm:$0xff]  ;;  %s303_s2 = smov [#allocation2]   ;;  %s305_s17 = smov 8  }
   0x6   :  { %51 = vmatpush.bf16.msra.mxu0 %v256_v2  ;;  %127 = vmatpush.bf16.msra.mxu1 %v264_v5  ;;  %v370_v13 = vld [vmem:[%s382_s3] sm:$0xf]  ;;  %s201_s3 = sshll.u32 %s303_s2, 4  ;;  %s202_s3 = int_to_ptr.vmem [resolvable:$true] %s201_s3 }
   0x7   :  { %v27_v15 = vperm.slane %v370_v13, 0  ;;  %v77_v22 = vperm.slane %v370_v13, 1  ;;  %v189_v58 = vperm.slane %v370_v13, 2  ;;  %v192_v61 = vperm.slane %v370_v13, 3 }
   0x9   :  { %223 = vmatmul.msk.bf16.vlgmr.msra.gmra.mxu0 %vm40_vm0, %v21_v6 }
   0xa   :  { %128 = vmatpush.bf16.msra.mxu1 %v263_v7  ;;  %v271_v30 = vpop.eup %270 }
   0xb   :  { %v147_v31 = vmul.f32 128.0, %v271_v30  ;;  %vm151_vm1 = vweird.f32 %v271_v30 }
   0xd   :  { %v148_v32 = vsub.f32 1.0, %v147_v31 }
   0xe   :  { %129 = vmatpush.bf16.msra.mxu1 %v262_v8 }
   0xf   :  { %v149_v33 = vmul.f32 %v271_v30, %v148_v32 }
  0x11   :  { %v150_v34 = vadd.f32 %v271_v30, %v149_v33 }
  0x12   :  { %130 = vmatpush.bf16.msra.mxu1 %v261_v9 }
  0x13   :  { %v152_v35 = vsel %vm151_vm1, %v271_v30, %v150_v34 }
  0x16   :  { %131 = vmatpush.bf16.msra.mxu1 %v260_v10 }
  0x1a   :  { %132 = vmatpush.bf16.msra.mxu1 %v259_v11 }
  0x1e   :  { %133 = vmatpush.bf16.msra.mxu1 %v258_v12 }
  0x86   :  { %v53_v14 = vpop.f32.mrf.mxu0 }
  0x87   :  { %v54_v16 = vadd.f32 %v53_v14, %v27_v15 }
  0x89   :  { %v58_v19 = vmax.f32 %v54_v16, 0.0 }
  0x8e   :  { %v55_v17 = vpop.f32.mrf.mxu0 }
  0x8f   :  { %v56_v18 = vadd.f32 %v55_v17, %v27_v15 }
  0x91   :  { %v59_v20 = vmax.f32 %v56_v18, 0.0 }
  0x93   :  { %v60_v21 = vpack.c.bf16 %v59_v20, %v58_v19 }
  0x95   :  { %134 = vmatmul.bf16.vlgmr.msra.gmra.mxu1 %v60_v21 }
 0x112   :  { %v135_v23 = vpop.f32.mrf.mxu1 }
 0x113   :  { %v136_v24 = vadd.f32 %v135_v23, %v77_v22 }
 0x115   :  { %v140_v25 = vadd.f32 %v136_v24, %v54_v16 }
 0x117   :  { %142 = vadd.xlane.f32.xlu0 %v140_v25 }
 0x11a   :  { %v137_v26 = vpop.f32.mrf.mxu1 }
 0x11b   :  { %v138_v27 = vadd.f32 %v137_v26, %v77_v22 }
 0x11d   :  { %v141_v28 = vadd.f32 %v138_v27, %v56_v18 }
 0x11f   :  { %144 = vadd.xlane.f32.xlu0 %v141_v28 }
 0x18a   :  { %v143_v36 = vpop.xlane.xlu0 %142 }
 0x18b   :  { %v153_v37 = vmul.f32 %v152_v35, %v143_v36 }
 0x18d   :  { %v155_v38 = vsub.f32 %v140_v25, %v153_v37 }
 0x18f   :  { %v157_v39 = vmul.f32 %v155_v38, %v155_v38 }
 0x191   :  { %159 = vadd.xlane.f32.xlu1 %v157_v39 }
 0x192   :  { %v145_v40 = vpop.xlane.xlu0 %144 }
 0x193   :  { %v154_v41 = vmul.f32 %v152_v35, %v145_v40 }
 0x195   :  { %v156_v42 = vsub.f32 %v141_v28, %v154_v41 }
 0x197   :  { %v158_v43 = vmul.f32 %v156_v42, %v156_v42 }
 0x199   :  { %161 = vadd.xlane.f32.xlu1 %v158_v43 }
 0x204   :  { %v160_v44 = vpop.xlane.xlu1 %159 }
 0x205   :  { %v163_v45 = vmul.f32 %v160_v44, %v152_v35 }
 0x207   :  { %v165_v46 = vadd.f32 1e-05, %v163_v45 }
 0x209   :  { %272 = vrsqrt.f32 %v165_v46  ;;  %vm173_vm3 = vweird.f32 %v165_v46 }
 0x20c   :  { %v162_v47 = vpop.xlane.xlu1 %161 }
 0x20d   :  { %v164_v48 = vmul.f32 %v162_v47, %v152_v35 }
 0x20f   :  { %v273_v49 = vpop.eup %272  ;;  %v166_v50 = vadd.f32 1e-05, %v164_v48 }
 0x210   :  { %v168_v51 = vmul.f32 %v273_v49, %v165_v46  ;;  %vm174_vm2 = vweird.f32 %v273_v49 }
 0x211   :  { %274 = vrsqrt.f32 %v166_v50  ;;  %vm175_vm4 = vmor %vm173_vm3, %vm174_vm2  ;;  %vm183_vm6 = vweird.f32 %v166_v50 }
 0x212   :  { %v169_v52 = vmul.f32 %v273_v49, %v168_v51 }
 0x214   :  { %v170_v53 = vmul.f32 0.5, %v169_v52 }
 0x216   :  { %v171_v54 = vsub.f32 1.5, %v170_v53 }
 0x217   :  { %v275_v55 = vpop.eup %274 }
 0x218   :  { %v172_v56 = vmul.f32 %v273_v49, %v171_v54  ;;  %v178_v57 = vmul.f32 %v275_v55, %v166_v50  ;;  %vm184_vm5 = vweird.f32 %v275_v55 }
 0x219   :  { %vm185_vm7 = vmor %vm183_vm6, %vm184_vm5 }
 0x21a   :  { %v176_v59 = vsel %vm175_vm4, %v273_v49, %v172_v56  ;;  %v179_v60 = vmul.f32 %v275_v55, %v178_v57 }
 0x21b   :  { %v187_v62 = vmul.f32 %v176_v59, %v155_v38 }
 0x21c   :  { %v180_v63 = vmul.f32 0.5, %v179_v60 }
 0x21d   :  { %v190_v0 = vmul.f32 %v189_v58, %v187_v62 }
 0x21e   :  { %v181_v1 = vsub.f32 1.5, %v180_v63 }
 0x21f   :  { %v193_v2 = vadd.f32 %v192_v61, %v190_v0 }
 0x220   :  { %v182_v3 = vmul.f32 %v275_v55, %v181_v1 }
 0x221   :  { %195 = vst [vmem:[#allocation2] sm:$0xff] %v193_v2 }
 0x222   :  { %v186_v4 = vsel %vm185_vm7, %v275_v55, %v182_v3 }
 0x223   :  { %v188_v5 = vmul.f32 %v186_v4, %v156_v42 }
 0x225   :  { %v191_v6 = vmul.f32 %v189_v58, %v188_v5 }
 0x227   :  { %v194_v7 = vadd.f32 %v192_v61, %v191_v6 }
 0x229   :  { %196 = vst [vmem:[#allocation2 + $0x8] sm:$0xff] %v194_v7 }
 0x22a   :  { %209 = dma.vmem_to_hbm [thread:$0]  %s202_s3, 256, %s204_s15, [#allocation3], %s304_s16, %s304_s16, %s305_s17  }
 0x22b   :  { %300 = dma.done.wait [#allocation3], 256  }
 0x22c   :  { %301 = vsyncadd [#allocation3], 4294967040 }
 0x22d   :  { %214 = vsyncpa [#allocation3], 1 }

</bundles_post_ra>
